<compile_context>
chip_gen: v6e
topology: v6e:2x2x1
jax: 0.10.0
libtpu: 0.0.40
codegen_flags: <defaults>
</compile_context>

<pallas_src>
import jax
import jax.numpy as jnp
from jax.experimental import pallas as pl
from jax.experimental.pallas import tpu as pltpu


def _discriminator_kernel(x_ref, w1_ref, b1_ref, w2_ref, b2_ref, o_ref):
    # x_ref : [TILE_N, infeat]    f32  (streamed per grid step)
    # w1_ref: [infeat, hidfeat]   bf16 (VMEM-resident across grid steps)
    # b1_ref: [1, hidfeat]        f32
    # w2_ref: [outfeat, hidfeat]  bf16 (PyTorch layout, resident; used NT)
    # b2_ref: [outfeat, 1]        f32
    # o_ref : [outfeat, TILE_N]   f32  (transposed output: lane axis = batch)

    # Cast x to bf16 in-kernel (VPU slot, hidden under the matmul) and run the
    # first Linear on the MXU with f32 accumulation, then add bias in f32.
    x = x_ref[...].astype(jnp.bfloat16)
    h = jnp.dot(x, w1_ref[...], preferred_element_type=jnp.float32)
    h = h + b1_ref[...]

    # LeakyReLU (PyTorch default negative_slope = 0.01): single vmax.
    h = jnp.maximum(h, jnp.float32(0.01) * h)

    # Dropout: identity in eval mode (see TODO at top of file).

    # Second Linear computed transposed: y^T = W2 . h^T  (NT matmul — both
    # operands contract on their last dim), so the output's lane axis is the
    # batch tile (dense multiple of 128 -> unmasked stores, no lane padding).
    yt = jax.lax.dot_general(
        w2_ref[...], h.astype(jnp.bfloat16),
        dimension_numbers=(((1,), (1,)), ((), ())),
        preferred_element_type=jnp.float32)
    yt = yt + b2_ref[...]

    # Sigmoid on the EUP; store lane-dense f32 [outfeat, TILE_N].
    o_ref[...] = jax.nn.sigmoid(yt).astype(o_ref.dtype)


def prepare_discriminator_params(w1, b1, w2, b2):
    """One-time re-layout of PyTorch nn.Linear parameters for the kernel.

    w1: [hidfeat, infeat], b1: [hidfeat], w2: [outfeat, hidfeat], b2: [outfeat].
    Done once (outside the per-call hot path) so the forward only launches the
    Pallas kernel plus a small final transpose."""
    w1t = jnp.asarray(w1.T, jnp.bfloat16)                     # [infeat, hidfeat]
    b1r = jnp.asarray(b1, jnp.float32).reshape(1, -1)         # [1, hidfeat]
    w2k = jnp.asarray(w2, jnp.bfloat16)                       # [outfeat, hidfeat]
    b2c = jnp.asarray(b2, jnp.float32).reshape(-1, 1)         # [outfeat, 1]
    return w1t, b1r, w2k, b2c


def discriminator_forward(x, params, *, tile_n=None):
    """x: [N, infeat] f32; params from prepare_discriminator_params().
    Returns sigmoid(leaky_relu(x @ w1.T + b1) @ w2.T + b2), shape [N, outfeat]."""
    w1t, b1r, w2k, b2c = params
    n, infeat = x.shape
    hidfeat = w1t.shape[1]
    outfeat = w2k.shape[0]

    # ---- batch tiling ------------------------------------------------------
    # tile_n is the *lane* axis of the transposed output, so it must be a
    # multiple of 128.  Default: target 2 grid steps (v7x has 2 TensorCores;
    # the extra step costs ~0.35 us on 1-TC chips, negligible).
    if tile_n is None:
        half = (n + 1) // 2
        tile_n = ((half + 127) // 128) * 128
        tile_n = max(128, min(tile_n, 2048))
    else:
        tile_n = max(128, ((int(tile_n) + 127) // 128) * 128)
    n_pad = ((n + tile_n - 1) // tile_n) * tile_n
    x_p = x if n_pad == n else jnp.pad(x, ((0, n_pad - n), (0, 0)))

    # Per-step VMEM: double-buffered x tile (2*tile_n*infeat*4 B) + small
    # resident weights + [outfeat, tile_n] output tile — well under budget on
    # every generation (incl. v7x's 64 MiB/TC) at these feature sizes.
    out_t = pl.pallas_call(
        _discriminator_kernel,
        out_shape=jax.ShapeDtypeStruct((outfeat, n_pad), jnp.float32),
        grid_spec=pltpu.PrefetchScalarGridSpec(
            num_scalar_prefetch=0,
            grid=(n_pad // tile_n,),
            in_specs=[
                pl.BlockSpec((tile_n, infeat), lambda i: (i, 0)),     # x: streamed
                pl.BlockSpec((infeat, hidfeat), lambda i: (0, 0)),    # W1: resident
                pl.BlockSpec((1, hidfeat), lambda i: (0, 0)),         # b1: resident
                pl.BlockSpec((outfeat, hidfeat), lambda i: (0, 0)),   # W2: resident
                pl.BlockSpec((outfeat, 1), lambda i: (0, 0)),         # b2: resident
            ],
            out_specs=pl.BlockSpec((outfeat, tile_n), lambda i: (0, i)),
        ),
        compiler_params=pltpu.CompilerParams(
            dimension_semantics=("parallel",),   # shard batch tiles across TCs
        ),
    )(x_p, w1t, b1r, w2k, b2c)

    # [outfeat, n_pad] -> [N, outfeat]  (small transpose of 8 x N elements)
    return out_t[:, :n].T


def _xavier_uniform(key, fan_out, fan_in):
    # Matches nn.init.xavier_uniform_ (gain=1) for a [fan_out, fan_in] weight.
    bound = jnp.sqrt(6.0 / (fan_in + fan_out))
    return jax.random.uniform(key, (fan_out, fan_in), jnp.float32, -bound, bound)


if __name__ == "__main__":
    # Shapes consistent with the module (infeat=hidfeat=32, outfeat=8); batch
    # of 512 gives a 2-step grid (256-row tiles) so the batch axis pipelines
    # and can shard across v7x's two TensorCores.
    N, INFEAT, HIDFEAT, OUTFEAT = 512, 32, 32, 8

    key = jax.random.PRNGKey(0)
    kx, kw1, kb1, kw2, kb2 = jax.random.split(key, 5)

    x = jax.random.normal(kx, (N, INFEAT), jnp.float32)

    # Xavier-uniform weights (as in Discriminator.weights_init); small nonzero
    # biases so the bias path is actually exercised.
    w1 = _xavier_uniform(kw1, HIDFEAT, INFEAT)                       # [hidfeat, infeat]
    b1 = 0.1 * jax.random.normal(kb1, (HIDFEAT,), jnp.float32)
    w2 = _xavier_uniform(kw2, OUTFEAT, HIDFEAT)                      # [outfeat, hidfeat]
    b2 = 0.1 * jax.random.normal(kb2, (OUTFEAT,), jnp.float32)

    params = prepare_discriminator_params(w1, b1, w2, b2)            # hoisted, once
    out = discriminator_forward(x, params)
    out = jax.block_until_ready(out)

    # Pure-JAX f32 reference (eval-mode dropout = identity).
    h_ref = x @ w1.T + b1
    h_ref = jnp.where(h_ref > 0, h_ref, 0.01 * h_ref)
    ref = jax.nn.sigmoid(h_ref @ w2.T + b2)

    assert out.shape == (N, OUTFEAT)
    # Tolerance loosened vs an all-f32 version because matmul inputs are bf16
    # (f32 accumulation keeps the error small; sigmoid compresses it further).
    assert jnp.allclose(out, ref, atol=2e-2, rtol=2e-2)

    print("KERNEL_OK")
</pallas_src>

<mosaic_0001>
module attributes {stable_mosaic.version = 11 : i64} {
  func.func @_discriminator_kernel(%arg0: i32, %arg1: memref<256x32xf32, #tpu.memory_space<vmem>>, %arg2: memref<32x32xbf16, #tpu.memory_space<vmem>>, %arg3: memref<1x32xf32, #tpu.memory_space<vmem>>, %arg4: memref<8x32xbf16, #tpu.memory_space<vmem>>, %arg5: memref<8x1xf32, #tpu.memory_space<vmem>>, %arg6: memref<8x256xf32, #tpu.memory_space<vmem>>) attributes {dimension_semantics = [#tpu.dimension_semantics<parallel>], iteration_bounds = array<i64: 2>, scalar_prefetch = 0 : i64, scratch_operands = 0 : i64, tpu.core_type = #tpu.core_type<tc>, window_params = [{transform_indices = @transform_0, window_bounds = array<i64: 256, 32>}, {pipeline_mode = #tpu.pipeline_mode<synchronous>, transform_indices = @transform_1, window_bounds = array<i64: 32, 32>}, {pipeline_mode = #tpu.pipeline_mode<synchronous>, transform_indices = @transform_2, window_bounds = array<i64: 1, 32>}, {pipeline_mode = #tpu.pipeline_mode<synchronous>, transform_indices = @transform_3, window_bounds = array<i64: 8, 32>}, {pipeline_mode = #tpu.pipeline_mode<synchronous>, transform_indices = @transform_4, window_bounds = array<i64: 8, 1>}, {transform_indices = @transform_5, window_bounds = array<i64: 8, 256>}]} {
    %c0 = arith.constant 0 : index
    %c0_0 = arith.constant 0 : index
    %0 = vector.load %arg1[%c0, %c0_0] : memref<256x32xf32, #tpu.memory_space<vmem>>, vector<256x32xf32>
    %1 = arith.truncf %0 : vector<256x32xf32> to vector<256x32xbf16>
    %c0_1 = arith.constant 0 : index
    %c0_2 = arith.constant 0 : index
    %2 = vector.load %arg2[%c0_1, %c0_2] : memref<32x32xbf16, #tpu.memory_space<vmem>>, vector<32x32xbf16>
    %cst = arith.constant dense<0.000000e+00> : vector<256x32xf32>
    %3 = tpu.matmul %1, %2, %cst {dimension_numbers = #tpu.dot_dimension_numbers<[1], [0], [0], [1], [0, 0, 1, 1], [], []>} : vector<256x32xbf16>, vector<32x32xbf16>, vector<256x32xf32> -> vector<256x32xf32>
    %c0_3 = arith.constant 0 : index
    %c0_4 = arith.constant 0 : index
    %4 = vector.load %arg3[%c0_3, %c0_4] : memref<1x32xf32, #tpu.memory_space<vmem>>, vector<1x32xf32>
    %5 = vector.broadcast %4 : vector<1x32xf32> to vector<256x32xf32>
    %6 = arith.addf %3, %5 : vector<256x32xf32>
    %cst_5 = arith.constant 0.00999999977 : f32
    %7 = vector.broadcast %cst_5 : f32 to vector<256x32xf32>
    %8 = arith.mulf %7, %6 : vector<256x32xf32>
    %9 = arith.maximumf %6, %8 : vector<256x32xf32>
    %c0_6 = arith.constant 0 : index
    %c0_7 = arith.constant 0 : index
    %10 = vector.load %arg4[%c0_6, %c0_7] : memref<8x32xbf16, #tpu.memory_space<vmem>>, vector<8x32xbf16>
    %11 = arith.truncf %9 : vector<256x32xf32> to vector<256x32xbf16>
    %cst_8 = arith.constant dense<0.000000e+00> : vector<8x256xf32>
    %12 = tpu.matmul %10, %11, %cst_8 {dimension_numbers = #tpu.dot_dimension_numbers<[1], [1], [0], [0], [0, 0, 1, 0], [], []>} : vector<8x32xbf16>, vector<256x32xbf16>, vector<8x256xf32> -> vector<8x256xf32>
    %c0_9 = arith.constant 0 : index
    %c0_10 = arith.constant 0 : index
    %13 = vector.load %arg5[%c0_9, %c0_10] : memref<8x1xf32, #tpu.memory_space<vmem>>, vector<8x1xf32>
    %14 = vector.broadcast %13 : vector<8x1xf32> to vector<8x256xf32>
    %15 = arith.addf %12, %14 : vector<8x256xf32>
    %16 = arith.negf %15 : vector<8x256xf32>
    %17 = math.exp %16 : vector<8x256xf32>
    %cst_11 = arith.constant 1.000000e+00 : f32
    %18 = vector.broadcast %cst_11 : f32 to vector<8x256xf32>
    %19 = arith.addf %18, %17 : vector<8x256xf32>
    %20 = arith.divf %18, %19 : vector<8x256xf32>
    %c0_12 = arith.constant 0 : index
    %c0_13 = arith.constant 0 : index
    %21 = vector.load %arg6[%c0_12, %c0_13] : memref<8x256xf32, #tpu.memory_space<vmem>>, vector<8x256xf32>
    tpu.vector_store %arg6[%c0_12, %c0_13], %20 {strides = array<i32>} : memref<8x256xf32, #tpu.memory_space<vmem>>, vector<8x256xf32>,
    return
  }
  func.func @transform_0(%arg0: i32) -> (i32, i32) {
    %c0_i32 = arith.constant 0 : i32
    %c0_i32_0 = arith.constant 0 : i32
    return %arg0, %c0_i32 : i32, i32
  }
  func.func @transform_1(%arg0: i32) -> (i32, i32) {
    %c0_i32 = arith.constant 0 : i32
    %c0_i32_0 = arith.constant 0 : i32
    %c0_i32_1 = arith.constant 0 : i32
    return %c0_i32, %c0_i32_0 : i32, i32
  }
  func.func @transform_2(%arg0: i32) -> (i32, i32) {
    %c0_i32 = arith.constant 0 : i32
    %c0_i32_0 = arith.constant 0 : i32
    %c0_i32_1 = arith.constant 0 : i32
    return %c0_i32, %c0_i32_0 : i32, i32
  }
  func.func @transform_3(%arg0: i32) -> (i32, i32) {
    %c0_i32 = arith.constant 0 : i32
    %c0_i32_0 = arith.constant 0 : i32
    %c0_i32_1 = arith.constant 0 : i32
    return %c0_i32, %c0_i32_0 : i32, i32
  }
  func.func @transform_4(%arg0: i32) -> (i32, i32) {
    %c0_i32 = arith.constant 0 : i32
    %c0_i32_0 = arith.constant 0 : i32
    %c0_i32_1 = arith.constant 0 : i32
    return %c0_i32, %c0_i32_0 : i32, i32
  }
  func.func @transform_5(%arg0: i32) -> (i32, i32) {
    %c0_i32 = arith.constant 0 : i32
    %c0_i32_0 = arith.constant 0 : i32
    return %c0_i32, %arg0 : i32, i32
  }
}

</mosaic_0001>

<bundles_post_ra>
// kernel: tpu_custom_call.1
= control target key start
LH: loop header
LB: loop body
LE: loop exit
PB: predicated region body
PF: predicated region fallthrough
CT: control target
= control target key end

     0   :  { %10 = vsyncpa [#allocation3], 0  ;;  %s1290_s0 = inlined_call_operand.vmem [shape: f32[512,32], index: 0, kind: input, shape index: {}]   ;;  %s1291_s1 = inlined_call_operand.vmem [shape: bf16[32,32], index: 1, kind: input, shape index: {}]   ;;  %s1292_s2 = inlined_call_operand.vmem [shape: f32[1,32], index: 2, kind: input, shape index: {}]   ;;  %s1293_s3 = inlined_call_operand.vmem [shape: bf16[8,32], index: 3, kind: input, shape index: {}]   ;;  %s1294_s4 = inlined_call_operand.vmem [shape: f32[8,1], index: 4, kind: input, shape index: {}]   ;;  %s1295_s5 = inlined_call_operand.hbm [shape: f32[8,512], index: 5, kind: output, shape index: {}]  }
   0x1   :  { %12 = vsyncpa [#allocation3 + $0x1], 0  ;;  %s1035_s18 = smov 0   ;;  %s1037_s19 = smov 0  }
   0x2   :  { %s1039_s20 = smov 0   ;;  %s1041_s21 = smov 0  }
   0x3 LB: > { %s1056_s22 = sadd.s32 4294967295, %s1001_s21   ;;  %s775_s23 = sadd.s32 4294967294, %s1001_s21   ;;  %s1001_s21 = sphi %s1041_s21, %s1301_s21   ;;  %s997_s20 = sphi %s1039_s20, %s1300_s20   ;;  %s993_s19 = sphi %s1037_s19, %s1299_s19   ;;  %s989_s18 = sphi %s1035_s18, %s1298_s18  }
   0x4   : > { %s1060_s24 = sadd.s32 1, %s1001_s21   ;;  %s135_s25 = sadd.s32 1, %s997_s20 }
   0x5   : > { %s132_s26 = ssub.s32 %s1001_s21, %s1060_s24  ;;  %p145_p0 = scmp.ne.s32.totalorder %s997_s20, %s993_s19 }
   0x6   : > { %p133_p1 = scmp.eq.s32.totalorder %s132_s26, 0  ;;  %p146_p2 = scmp.eq.s32.totalorder %s1056_s22, 1 }
   0x7   : > { %p151_p3 = scmp.ne.s32.totalorder %s993_s19, %s989_s18  ;;  %p152_p4 = scmp.eq.s32.totalorder %s775_s23, 1 }
   0x8   : > { %s1071_s27 = scalar_select %p133_p1, %s997_s20, %s135_s25  }
   0x9   : > { %p1073_p5 = por %p146_p2, %p145_p0  ;;  %p1077_p6 = por %p152_p4, %p151_p3 }
   0xa   : > { %p778_p7 = scmp.ge.s32.totalorder %s1001_s21, 1  ;;  %p191_p8 = scmp.lt.s32.totalorder %s1001_s21, 3 }
   0xc   : > { %p192_p9 = pnand %p778_p7, %p191_p8 }
   0xd   : > { %s780_s7 = sshll.u32 (!%p192_p9), %s1056_s22, 5  ;;  %s216_s26 = sand.u32 (!%p192_p9), 1, %s993_s19  }
   0xe   : > { %195 = sbr.rel (%p192_p9) target bundleno = 595 (0x253), region = 40  ;;  %p220_p10 = scmp.lt.s32.totalorder (!%p192_p9), %s780_s7, 63 }
   0xf   : > { %s779_s30 = sshll.u32 (!%p192_p9), %s216_s26, 4  ;;  %s809_s6 = sshll.u32 (!%p192_p9), %s1056_s22, 8 }
  0x10   : > { %s1255_s11 = scalar_lea.hbm (!%p192_p9), %s1295_s5, %s809_s6  ;;  %s702_s12 = scalar_lea.sflag (!%p192_p9), [#allocation3], %s216_s26 }
  0x11   : > { %s1004_s14 = smov (!%p192_p9), [#allocation2]  }
  0x12   : > { %s945_s22 = sshll.u32 (!%p192_p9), %s1004_s14, 4  ;;  %s946_s22 = int_to_ptr.vmem [resolvable:$false] %s945_s22 }
  0x13   : > { %v931_v0 = vld [vmem:[%s1291_s1 + $0x8] sm:$0xff]   ;;  %v932_v1 = vld [vmem:[%s1291_s1] sm:$0xff]   ;;  %s1303_s7 = smov (!%p220_p10, %s780_s7), 63  ;;  %vm298_vm0 = vcmask 261120   ;;  %v1003_v61 = vmov 0   ;;  %s947_s15 = scalar_lea.vmem %s946_s22, 512 }
  0x14   : > { %846 = vmatprep.subr.bf16.mxu0 %v931_v0  ;;  %s781_s10 = sshll.u32 %s1303_s7, 3  ;;  %v1146_v50 = vld [vmem:[%s1292_s2] ss:$0 sm:$0xff]  ;;  %930 = vset.pattern.permute.xlu0 %v1003_v61  ;;  %s218_s7 = scalar_lea.vmem [#allocation2], %s779_s30 }
  0x15   : > { %847 = vmatpush3.bf16.msra.mxu0 %v931_v0  ;;  %s1093_s13 = scalar_lea.vmem %s1290_s0, %s781_s10  ;;  %v1151_v51 = vld [vmem:[%s1293_s3] sm:$0xf]  ;;  %s716_s8 = sshll.u32 %s218_s7, 4  ;;  %s717_s8 = int_to_ptr.vmem [resolvable:$true] %s716_s8 }
  0x16   : > { %848 = vmatprep.subr.bf16.mxu0 %v932_v1  ;;  %v227_v2 = vld [vmem:[%s1093_s13] sm:$0xff]  ;;  %v228_v3 = vld [vmem:[%s1093_s13 + $0x8] sm:$0xff]  ;;  %v229_v4 = vld [vmem:[%s1093_s13 + $0x10] sm:$0xff]  ;;  %844 = vmatprep.mubr.msk.bf16.mxu1 %vm298_vm0, %v1151_v51  ;;  %p948_p0 = scmp.lt.s32.totalorder %s717_s8, %s946_s22 }
  0x17   : > { %v259_v5 = vpack.c.bf16 %v228_v3, %v227_v2  ;;  %v230_v6 = vld [vmem:[%s1093_s13 + $0x18] sm:$0xff]  ;;  %v231_v7 = vld [vmem:[%s1093_s13 + $0x20] sm:$0xff]  ;;  %v232_v8 = vld [vmem:[%s1093_s13 + $0x28] sm:$0xff] }
  0x18   : > { %v260_v9 = vpack.c.bf16 %v230_v6, %v229_v4  ;;  %v261_v10 = vpack.c.bf16 %v232_v8, %v231_v7  ;;  %v233_v11 = vld [vmem:[%s1093_s13 + $0x30] sm:$0xff]  ;;  %v234_v12 = vld [vmem:[%s1093_s13 + $0x38] sm:$0xff]  ;;  %v235_v13 = vld [vmem:[%s1093_s13 + $0x40] sm:$0xff] }
  0x19   : > { %849 = vmatpush3.bf16.msra.mxu0 %v932_v1  ;;  %850 = vmatprep.mubr.msk.bf16.mxu0 %vm298_vm0, %v259_v5  ;;  %v236_v14 = vld [vmem:[%s1093_s13 + $0x48] sm:$0xff]  ;;  %v262_v15 = vpack.c.bf16 %v234_v12, %v233_v11  ;;  %v237_v17 = vld [vmem:[%s1093_s13 + $0x50] sm:$0xff]  ;;  %v238_v18 = vld [vmem:[%s1093_s13 + $0x58] sm:$0xff] }
  0x1a   : > { %v263_v16 = vpack.c.bf16 %v236_v14, %v235_v13  ;;  %v239_v19 = vld [vmem:[%s1093_s13 + $0x60] sm:$0xff]  ;;  %v240_v20 = vld [vmem:[%s1093_s13 + $0x68] sm:$0xff]  ;;  %v264_v21 = vpack.c.bf16 %v238_v18, %v237_v17  ;;  %v241_v23 = vld [vmem:[%s1093_s13 + $0x70] sm:$0xff] }
  0x1b   : > { %v265_v22 = vpack.c.bf16 %v240_v20, %v239_v19  ;;  %v242_v24 = vld [vmem:[%s1093_s13 + $0x78] sm:$0xff]  ;;  %v243_v25 = vld [vmem:[%s1093_s13 + $0x80] sm:$0xff]  ;;  %v244_v26 = vld [vmem:[%s1093_s13 + $0x88] sm:$0xff] }
  0x1c   : > { %851 = vmatmul.mubr.msk.bf16.vlgmr.msra.gmra.mxu0 %vm298_vm0, %v260_v9  ;;  %v266_v27 = vpack.c.bf16 %v242_v24, %v241_v23  ;;  %v267_v28 = vpack.c.bf16 %v244_v26, %v243_v25  ;;  %v245_v29 = vld [vmem:[%s1093_s13 + $0x90] sm:$0xff]  ;;  %v246_v30 = vld [vmem:[%s1093_s13 + $0x98] sm:$0xff]  ;;  %v247_v31 = vld [vmem:[%s1093_s13 + $0xa0] sm:$0xff] }
  0x1d   : > { %854 = vmatprep.mubr.msk.bf16.mxu0 %vm298_vm0, %v261_v10  ;;  %v248_v32 = vld [vmem:[%s1093_s13 + $0xa8] sm:$0xff]  ;;  %v268_v33 = vpack.c.bf16 %v246_v30, %v245_v29  ;;  %v249_v35 = vld [vmem:[%s1093_s13 + $0xb0] sm:$0xff]  ;;  %v250_v36 = vld [vmem:[%s1093_s13 + $0xb8] sm:$0xff] }
  0x1e   : > { %v269_v34 = vpack.c.bf16 %v248_v32, %v247_v31  ;;  %v251_v37 = vld [vmem:[%s1093_s13 + $0xc0] sm:$0xff]  ;;  %v252_v38 = vld [vmem:[%s1093_s13 + $0xc8] sm:$0xff]  ;;  %v270_v39 = vpack.c.bf16 %v250_v36, %v249_v35  ;;  %v253_v41 = vld [vmem:[%s1093_s13 + $0xd0] sm:$0xff] }
  0x1f   : > { %v271_v40 = vpack.c.bf16 %v252_v38, %v251_v37  ;;  %v254_v42 = vld [vmem:[%s1093_s13 + $0xd8] sm:$0xff]  ;;  %v255_v43 = vld [vmem:[%s1093_s13 + $0xe0] sm:$0xff]  ;;  %v256_v44 = vld [vmem:[%s1093_s13 + $0xe8] sm:$0xff] }
  0x20   : > { %v272_v45 = vpack.c.bf16 %v254_v42, %v253_v41  ;;  %v273_v46 = vpack.c.bf16 %v256_v44, %v255_v43  ;;  %v257_v47 = vld [vmem:[%s1093_s13 + $0xf0] sm:$0xff]  ;;  %v258_v48 = vld [vmem:[%s1093_s13 + $0xf8] sm:$0xff]  ;;  %v589_v59 = vld [vmem:[%s1294_s4] sm:$0xff]  ;;  %s941_s13 = scalar_lea.vmem %s717_s8, 256 }
  0x21   : > { %v274_v49 = vpack.c.bf16 %v258_v48, %v257_v47  ;;  %592 = vperm.xlu0 %930, %v589_v59   ;;  %p942_p11 = scmp.ne.s32.totalorder %s717_s8, %s941_s13  ;;  %p949_p1 = scmp.lt.s32.totalorder %s947_s15, %s941_s13 }
  0x23   : > { %p943_p12 = pnand %p942_p11, %p1073_p5  ;;  %p950_p2 = por %p949_p1, %p948_p0 }
  0x24   : > { %855 = vmatmul.mubr.msk.bf16.gmra.mxu0 %vm298_vm0, %v262_v15 }
  0x25   : > { %858 = vmatprep.mubr.msk.bf16.mxu0 %vm298_vm0, %v263_v16  ;;  %p944_p13 = pneg %p943_p12 }
  0x27   : > { %p951_p3 = pnand %p950_p2, %p944_p13 }
  0x2c   : > { %859 = vmatmul.mubr.msk.bf16.gmra.mxu0 %vm298_vm0, %v264_v21 }
  0x2d   : > { %862 = vmatprep.mubr.msk.bf16.mxu0 %vm298_vm0, %v265_v22 }
  0x34   : > { %863 = vmatmul.mubr.msk.bf16.gmra.mxu0 %vm298_vm0, %v266_v27 }
  0x35   : > { %866 = vmatprep.mubr.msk.bf16.mxu0 %vm298_vm0, %v267_v28 }
  0x3c   : > { %867 = vmatmul.mubr.msk.bf16.gmra.mxu0 %vm298_vm0, %v268_v33 }
  0x3d   : > { %870 = vmatprep.mubr.msk.bf16.mxu0 %vm298_vm0, %v269_v34 }
  0x44   : > { %871 = vmatmul.mubr.msk.bf16.gmra.mxu0 %vm298_vm0, %v270_v39 }
  0x45   : > { %874 = vmatprep.mubr.msk.bf16.mxu0 %vm298_vm0, %v271_v40 }
  0x4c   : > { %875 = vmatmul.mubr.msk.bf16.gmra.mxu0 %vm298_vm0, %v272_v45 }
  0x4d   : > { %878 = vmatprep.mubr.msk.bf16.mxu0 %vm298_vm0, %v273_v46 }
  0x54   : > { %879 = vmatmul.mubr.msk.bf16.gmra.mxu0 %vm298_vm0, %v274_v49 }
  0xdc   : > { %v852_v52 = vpop.f32.mrf.mxu0 }
  0xdd   : > { %v390_v53 = vadd.f32 %v852_v52, %v1146_v50 }
  0xde   : > { %v381_v54 = vpop.f32.mrf.mxu0 }
  0xdf   : > { %v382_v55 = vadd.f32 %v1146_v50, %v381_v54  ;;  %v510_v57 = vmul.f32 0.01, %v390_v53 }
  0xe0   : > { %v853_v56 = vpop.f32.mrf.mxu0 }
  0xe1   : > { %v393_v58 = vadd.f32 %v853_v56, %v1146_v50  ;;  %v508_v0 = vmul.f32 0.01, %v382_v55  ;;  %v542_v2 = vmax.f32 %v390_v53, %v510_v57 }
  0xe2   : > { %v384_v60 = vpop.f32.mrf.mxu0 }
  0xe3   : > { %v511_v62 = vmul.f32 0.01, %v393_v58  ;;  %v385_v63 = vadd.f32 %v1146_v50, %v384_v60  ;;  %v540_v9 = vmax.f32 %v382_v55, %v508_v0 }
  0xe4   : > { %v856_v1 = vpop.f32.mrf.mxu0 }
  0xe5   : > { %v543_v3 = vmax.f32 %v393_v58, %v511_v62  ;;  %v509_v4 = vmul.f32 0.01, %v385_v63  ;;  %v406_v5 = vadd.f32 %v856_v1, %v1146_v50 }
  0xe6   : > { %v397_v6 = vpop.f32.mrf.mxu0 }
  0xe7   : > { %v541_v7 = vmax.f32 %v385_v63, %v509_v4  ;;  %v1163_v8 = vpack.c.bf16 %v543_v3, %v542_v2  ;;  %v398_v10 = vadd.f32 %v1146_v50, %v397_v6  ;;  %v514_v12 = vmul.f32 0.01, %v406_v5 }
  0xe8   : > { %v857_v11 = vpop.f32.mrf.mxu0 }
  0xe9   : > { %v409_v13 = vadd.f32 %v857_v11, %v1146_v50  ;;  %v1167_v15 = vpack.c.bf16 %v541_v7, %v540_v9  ;;  %v512_v18 = vmul.f32 0.01, %v398_v10  ;;  %v546_v20 = vmax.f32 %v406_v5, %v514_v12 }
  0xea   : > { %v400_v14 = vpop.f32.mrf.mxu0 }
  0xeb   : > { %v515_v16 = vmul.f32 0.01, %v409_v13  ;;  %v401_v17 = vadd.f32 %v1146_v50, %v400_v14  ;;  %v544_v26 = vmax.f32 %v398_v10, %v512_v18 }
  0xec   : > { %v1170_v19 = vpop.f32.mrf.mxu0 }
  0xed   : > { %v547_v21 = vmax.f32 %v409_v13, %v515_v16  ;;  %v513_v22 = vmul.f32 0.01, %v401_v17 }
  0xee   : > { %v1172_v23 = vpop.f32.mrf.mxu0 }
  0xef   : > { %v545_v24 = vmax.f32 %v401_v17, %v513_v22  ;;  %v1174_v25 = vpack.c.bf16 %v547_v21, %v546_v20 }
  0xf0   : > { %v1176_v27 = vpop.f32.mrf.mxu0 }
  0xf1   : > { %v1180_v29 = vpack.c.bf16 %v545_v24, %v544_v26 }
  0xf2   : > { %v1178_v28 = vpop.f32.mrf.mxu0 }
  0xf4   : > { %v864_v30 = vpop.f32.mrf.mxu0 }
  0xf5   : > { %v438_v62 = vadd.f32 %v864_v30, %v1146_v50 }
  0xf6   : > { %v429_v31 = vpop.f32.mrf.mxu0 }
  0xf7   : > { %v522_v3 = vmul.f32 0.01, %v438_v62  ;;  %v430_v13 = vadd.f32 %v1146_v50, %v429_v31  ;;  %v425_v31 = vadd.f32 %v1176_v27, %v1146_v50 }
  0xf8   : > { %v865_v32 = vpop.f32.mrf.mxu0 }
  0xf9   : > { %v441_v60 = vadd.f32 %v865_v32, %v1146_v50  ;;  %v554_v12 = vmax.f32 %v438_v62, %v522_v3  ;;  %v520_v32 = vmul.f32 0.01, %v430_v13 }
  0xfa   : > { %v432_v33 = vpop.f32.mrf.mxu0 }
  0xfb   : > { %v523_v0 = vmul.f32 0.01, %v441_v60  ;;  %v433_v7 = vadd.f32 %v1146_v50, %v432_v33 }
  0xfc   : > { %v868_v34 = vpop.f32.mrf.mxu0 }
  0xfd   : > { %v454_v35 = vadd.f32 %v868_v34, %v1146_v50  ;;  %v555_v6 = vmax.f32 %v441_v60, %v523_v0  ;;  %v521_v20 = vmul.f32 0.01, %v433_v7 }
  0xfe   : > { %v445_v36 = vpop.f32.mrf.mxu0 }
  0xff   : > { %v446_v37 = vadd.f32 %v1146_v50, %v445_v36  ;;  %v526_v39 = vmul.f32 0.01, %v454_v35  ;;  %v580_v21 = vpack.c.bf16 %v555_v6, %v554_v12 }
 0x100   : > { %v869_v38 = vpop.f32.mrf.mxu0 }
 0x101   : > { %v457_v40 = vadd.f32 %v869_v38, %v1146_v50  ;;  %v524_v42 = vmul.f32 0.01, %v446_v37  ;;  %v558_v46 = vmax.f32 %v454_v35, %v526_v39 }
 0x102   : > { %v448_v41 = vpop.f32.mrf.mxu0 }
 0x103   : > { %v527_v43 = vmul.f32 0.01, %v457_v40  ;;  %v449_v44 = vadd.f32 %v1146_v50, %v448_v41  ;;  %v556_v52 = vmax.f32 %v446_v37, %v524_v42  ;;  %v553_v37 = vmax.f32 %v433_v7, %v521_v20 }
 0x104   : > { %v1186_v45 = vpop.f32.mrf.mxu0  ;;  %v422_v41 = vadd.f32 %v1170_v19, %v1146_v50  ;;  %v552_v42 = vmax.f32 %v430_v13, %v520_v32 }
 0x105   : > { %v559_v47 = vmax.f32 %v457_v40, %v527_v43  ;;  %v525_v48 = vmul.f32 0.01, %v449_v44  ;;  %v620_v40 = vsel %vm298_vm0, %v580_v21, 0 }
 0x106   : > { %v1188_v49 = vpop.f32.mrf.mxu0  ;;  %v579_v27 = vpack.c.bf16 %v553_v37, %v552_v42 }
 0x107   : > { %v1190_v53 = vpack.c.bf16 %v559_v47, %v558_v46  ;;  %v557_v54 = vmax.f32 %v449_v44, %v525_v48  ;;  %v519_v44 = vmul.f32 0.01, %v425_v31  ;;  %v518_v48 = vmul.f32 0.01, %v422_v41 }
 0x108   : > { %v1192_v55 = vpop.f32.mrf.mxu0  ;;  %v617_v19 = vsel %vm298_vm0, %v579_v27, 0 }
 0x109   : > { %v1194_v56 = vpack.c.bf16 %v557_v54, %v556_v52  ;;  %v551_v60 = vmax.f32 %v425_v31, %v519_v44  ;;  %v550_v0 = vmax.f32 %v422_v41, %v518_v48 }
 0x10a   : > { %v1196_v57 = vpop.f32.mrf.mxu0 }
 0x10c   : > { %v876_v58 = vpop.f32.mrf.mxu0 }
 0x10d   : > { %v486_v33 = vadd.f32 %v876_v58, %v1146_v50  ;;  %v417_v58 = vadd.f32 %v1146_v50, %v1178_v28 }
 0x10e   : > { %v477_v59 = vpop.f32.mrf.mxu0 }
 0x10f   : > { %v534_v43 = vmul.f32 0.01, %v486_v33  ;;  %v478_v54 = vadd.f32 %v1146_v50, %v477_v59  ;;  %v473_v59 = vadd.f32 %v1192_v55, %v1146_v50  ;;  %v465_v55 = vadd.f32 %v1146_v50, %v1196_v57  ;;  %v593_v57 = vpop.permute.xlu0 %592 }
 0x110   : > { %v877_v61 = vpop.f32.mrf.mxu0 }
 0x111   : > { %v489_v22 = vadd.f32 %v877_v61, %v1146_v50  ;;  %v566_v52 = vmax.f32 %v486_v33, %v534_v43 }
 0x112   : > { %v480_v63 = vpop.f32.mrf.mxu0 }
 0x113   : > { %v535_v38 = vmul.f32 0.01, %v489_v22  ;;  %v481_v47 = vadd.f32 %v1146_v50, %v480_v63  ;;  %v517_v63 = vmul.f32 0.01, %v417_v58 }
 0x114   : > { %v880_v1 = vpop.f32.mrf.mxu0 }
 0x115   : > { %v502_v2 = vadd.f32 %v880_v1, %v1146_v50  ;;  %v567_v46 = vmax.f32 %v489_v22, %v535_v38  ;;  %v533_v62 = vmul.f32 0.01, %v481_v47  ;;  %v414_v1 = vadd.f32 %v1146_v50, %v1172_v23 }
 0x116   : > { %v493_v4 = vpop.f32.mrf.mxu0  ;;  %v549_v7 = vmax.f32 %v417_v58, %v517_v63 }
 0x117   : > { %v494_v5 = vadd.f32 %v1146_v50, %v493_v4  ;;  %v538_v10 = vmul.f32 0.01, %v502_v2  ;;  %v586_v61 = vpack.c.bf16 %v567_v46, %v566_v52  ;;  %v565_v3 = vmax.f32 %v481_v47, %v533_v62 }
 0x118   : > { %v881_v9 = vpop.f32.mrf.mxu0  ;;  %v578_v4 = vpack.c.bf16 %v551_v60, %v550_v0  ;;  %v516_v28 = vmul.f32 0.01, %v414_v1 }
 0x119   : > { %v505_v11 = vadd.f32 %v881_v9, %v1146_v50  ;;  %v536_v16 = vmul.f32 0.01, %v494_v5  ;;  %v570_v24 = vmax.f32 %v502_v2, %v538_v10  ;;  %v532_v2 = vmul.f32 0.01, %v478_v54 }
 0x11a   : > { %v496_v14 = vpop.f32.mrf.mxu0  ;;  %v531_v9 = vmul.f32 0.01, %v473_v59  ;;  %v548_v23 = vmax.f32 %v414_v1, %v516_v28 }
 0x11b   : > { %v539_v17 = vmul.f32 0.01, %v505_v11  ;;  %v497_v18 = vadd.f32 %v1146_v50, %v496_v14  ;;  %v568_v34 = vmax.f32 %v494_v5, %v536_v16  ;;  %v470_v5 = vadd.f32 %v1186_v45, %v1146_v50 }
 0x11c   : > { %v564_v6 = vmax.f32 %v478_v54, %v532_v2  ;;  %v563_v13 = vmax.f32 %v473_v59, %v531_v9  ;;  %v577_v14 = vpack.c.bf16 %v549_v7, %v548_v23  ;;  %v462_v45 = vadd.f32 %v1146_v50, %v1188_v49 }
 0x11d   : > { %v571_v26 = vmax.f32 %v505_v11, %v539_v17  ;;  %v537_v30 = vmul.f32 0.01, %v497_v18  ;;  %v614_v11 = vsel %vm298_vm0, %v578_v4, 0  ;;  %v530_v12 = vmul.f32 0.01, %v470_v5 }
 0x11e   : > { %v585_v10 = vpack.c.bf16 %v565_v3, %v564_v6  ;;  %v611_v20 = vsel %vm298_vm0, %v577_v14, 0  ;;  %v528_v21 = vmul.f32 0.01, %v462_v45  ;;  %v605_v50 = vsel %vm298_vm0, %v1180_v29, 0 }
 0x11f   : > { %v569_v35 = vmax.f32 %v497_v18, %v537_v30  ;;  %v588_v36 = vpack.c.bf16 %v571_v26, %v570_v24  ;;  %v562_v16 = vmax.f32 %v470_v5, %v530_v12  ;;  %v529_v18 = vmul.f32 0.01, %v465_v55 }
 0x120   : > { %v560_v24 = vmax.f32 %v462_v45, %v528_v21  ;;  %v608_v30 = vsel %vm298_vm0, %v1174_v25, 0  ;;  %v602_v49 = vsel %vm298_vm0, %v1163_v8, 0  ;;  %v599_v25 = vsel %vm298_vm0, %v1167_v15, 0 }
 0x121   : > { %v587_v39 = vpack.c.bf16 %v569_v35, %v568_v34  ;;  %882 = vmatprep.subr.msk.bf16.mxu1 %vm298_vm0, %v588_v36  ;;  %v584_v17 = vpack.c.bf16 %v563_v13, %v562_v16  ;;  %v561_v22 = vmax.f32 %v465_v55, %v529_v18 }
 0x122   : > { %829 = vmatpush3.bf16.xpose.msra.mxu1 %v620_v40 }
 0x123   : > { %883 = vmatprep.subr.msk.bf16.mxu1 %vm298_vm0, %v587_v39  ;;  %v583_v26 = vpack.c.bf16 %v561_v22, %v560_v24 }
 0x12a   : > { %831 = vmatpush3.bf16.xpose.msra.mxu1 %v617_v19 }
 0x12b   : > { %884 = vmatprep.subr.msk.bf16.mxu1 %vm298_vm0, %v586_v61 }
 0x132   : > { %833 = vmatpush3.bf16.xpose.msra.mxu1 %v614_v11 }
 0x133   : > { %885 = vmatprep.subr.msk.bf16.mxu1 %vm298_vm0, %v585_v10 }
 0x13a   : > { %835 = vmatpush3.bf16.xpose.msra.mxu1 %v611_v20 }
 0x13b   : > { %886 = vmatprep.subr.msk.bf16.mxu1 %vm298_vm0, %v584_v17 }
 0x142   : > { %837 = vmatpush3.bf16.xpose.msra.mxu1 %v608_v30 }
 0x143   : > { %887 = vmatprep.subr.msk.bf16.mxu1 %vm298_vm0, %v583_v26 }
 0x14a   : > { %839 = vmatpush3.bf16.xpose.msra.mxu1 %v605_v50 }
 0x14b   : > { %888 = vmatprep.subr.msk.bf16.mxu1 %vm298_vm0, %v1190_v53 }
 0x152   : > { %841 = vmatpush3.bf16.xpose.msra.mxu1 %v602_v49 }
 0x153   : > { %889 = vmatprep.subr.msk.bf16.mxu1 %vm298_vm0, %v1194_v56 }
 0x15a   : > { %843 = vmatpush3.bf16.xpose.msra.mxu1 %v599_v25 }
 0x161   : > { %845 = vmatmul.mubr.msk.bf16.vlgmr.msra.gmra.mxu1 %vm298_vm0, %v1151_v51 }
 0x221   : > { %v680_v29 = vpop.f32.mrf.mxu1 }
 0x222   : > { %v681_v32 = vadd.f32 %v680_v29, %v593_v57 }
 0x223   : > { %v682_v33 = vpop.f32.mrf.mxu1 }
 0x224   : > { %v802_v53 = vmul.f32 -1.442695, %v681_v32  ;;  %v683_v34 = vadd.f32 %v682_v33, %v593_v57 }
 0x225   : > { %v684_v8 = vpop.f32.mrf.mxu1 }
 0x226   : > { %933 = vpow2.f32 %v802_v53  ;;  %v803_v35 = vmul.f32 -1.442695, %v683_v34 }
 0x227   : > { %v685_v36 = vpop.f32.mrf.mxu1 }
 0x228   : > { %935 = vpow2.f32 %v803_v35 }
 0x233   : > { %v934_v56 = vpop.eup %933 }
 0x234   : > { %v693_v31 = vadd.f32 1.0, %v934_v56 }
 0x235   : > { %v936_v15 = vpop.eup %935 }
 0x236   : > { %937 = vrcp.f32 %v693_v31  ;;  %v694_v37 = vadd.f32 1.0, %v936_v15 }
 0x238   : > { %939 = vrcp.f32 %v694_v37 }
 0x243   : > { %v938_v51 = vpop.eup %937 }
 0x244   : > { %699 = vst [vmem:[%s218_s7] sm:$0xff] %v938_v51 }
 0x245   : > { %v940_v38 = vpop.eup %939 }
 0x246   : > { %700 = vst [vmem:[%s218_s7 + $0x8] sm:$0xff] %v940_v38 }
 0x247   : > { %954 = shalt.err (!%p951_p3)
}
 0x248   : > { %s955_s16 = scalar_lea.hbm %s1255_s11, 256  ;;  %s959_s25 = scalar_lea.hbm %s1295_s5, 512 }
 0x249   : > { %p956_p4 = scmp.ne.s32.totalorder %s1255_s11, %s955_s16  ;;  %p960_p9 = scmp.lt.s32.totalorder %s1255_s11, %s1295_s5 }
 0x24a   : > { %p961_p10 = scmp.lt.s32.totalorder %s959_s25, %s955_s16 }
 0x24b   : > { %p957_p7 = pnand %p956_p4, %p1073_p5 }
 0x24c   : > { %p962_p11 = por %p961_p10, %p960_p9 }
 0x24d   : > { %p958_p8 = pneg %p957_p7 }
 0x24f   : > { %p963_p12 = pnand %p962_p11, %p958_p8 }
 0x251   : > { %966 = shalt.err (!%p963_p12)
}
 0x252   : > { %890 = dma.vmem_to_hbm [thread:$0]  (%p1073_p5), %s717_s8, 256, %s1255_s11, %s702_s12  }
 0x253 PF: > { %p896_p13 = scmp.ge.s32.totalorder %s1001_s21, 2  ;;  %s728_s6 = sand.u32 1, %s989_s18  }
 0x254   : > { %s729_s7 = scalar_lea.sflag [#allocation3], %s728_s6 }
 0x255   : > { %p893_p0 = pnand %p896_p13, %p1077_p6 }
 0x257   : > { %p894_p1 = pneg %p893_p0 }
 0x259   : > { %984 = dma.done.wait (%p894_p1), %s729_s7, 256  }
 0x25a   : > { %986 = vsyncadd (%p894_p1), %s729_s7, 4294967040  ;;  %p15_p2 = scmp.ge.s32.totalorder %s1060_s24, 4   ;;  %s1298_s18 = smov %s993_s19 }
 0x25b   : > { %s1299_s19 = smov %s997_s20  ;;  %s1300_s20 = smov %s1071_s27 }
 0x25c   : > { %s1301_s21 = smov %s1060_s24  ;;  %17 = sbr.rel (!%p15_p2) target bundleno = 3 (0x3), region = 75 }
 0x261   :  { %734 = vsyncpa [#allocation3], 1 }
 0x262   :  { %736 = vsyncpa [#allocation3 + $0x1], 1 }

</bundles_post_ra>
